<compile_context>
chip_gen: v5e
topology: v5e:2x2
jax: 0.10.0
libtpu: 0.0.40
codegen_flags: <defaults>
</compile_context>

<pallas_src>
import jax
import jax.numpy as jnp
from jax import lax
from jax.experimental import pallas as pl
from jax.experimental.pallas import tpu as pltpu


def _round_up(x, m):
    return (x + m - 1) // m * m


def irt_kernel(sid_ref, qid_ref, theta_ref, beta_ref, out_ref):
    # sid_ref / qid_ref : (1, B_TILE) int32   -- ids for this batch tile
    # theta_ref         : (S, D) f32          -- VMEM-resident student table
    # beta_ref          : (Q, D) f32          -- VMEM-resident question table
    # out_ref           : (1, B_TILE) f32     -- lane-dense predictions
    S = theta_ref.shape[0]
    Q = beta_ref.shape[0]
    b_tile = sid_ref.shape[1]

    # Row-sum prologue (tables stay resident across grid steps; this is cheap
    # relative to the per-tile gather below).
    theta_sums = jnp.sum(theta_ref[...], axis=1, keepdims=True)   # (S, 1)
    beta_sums = jnp.sum(beta_ref[...], axis=1, keepdims=True)     # (Q, 1)

    sid = sid_ref[...]                                            # (1, B_TILE)
    qid = qid_ref[...]                                            # (1, B_TILE)

    # Vectorized in-VMEM gather: one-hot compare + select + sublane reduce.
    # Exact in f32 (no matmul precision concerns).
    s_iota = lax.broadcasted_iota(jnp.int32, (S, b_tile), 0)      # row index s
    q_iota = lax.broadcasted_iota(jnp.int32, (Q, b_tile), 0)      # row index q
    theta_g = jnp.sum(jnp.where(s_iota == sid, theta_sums, 0.0),
                      axis=0, keepdims=True)                      # (1, B_TILE)
    beta_g = jnp.sum(jnp.where(q_iota == qid, beta_sums, 0.0),
                     axis=0, keepdims=True)                       # (1, B_TILE)

    logit = theta_g - beta_g                                      # (1, B_TILE)
    out_ref[...] = jax.nn.sigmoid(logit)


def irt_1pl_forward(theta_table, beta_table, student_ids, question_ids,
                    *, b_tile=1024):
    """sigmoid(sum(theta[sid] - beta[qid], axis=1, keepdims=True)) -> (B, 1)."""
    B = student_ids.shape[0]
    S, D = theta_table.shape
    Q, D2 = beta_table.shape
    assert D == D2

    # Lane-dense tile size: multiple of 128, no bigger than the padded batch.
    b_tile = min(b_tile, _round_up(max(B, 1), 128))
    B_pad = _round_up(max(B, 1), b_tile)
    num_tiles = B_pad // b_tile

    # Pad ids with 0 (a valid row); padded lanes are discarded after the call.
    sid = jnp.zeros((1, B_pad), jnp.int32).at[0, :B].set(
        student_ids.astype(jnp.int32))
    qid = jnp.zeros((1, B_pad), jnp.int32).at[0, :B].set(
        question_ids.astype(jnp.int32))

    out = pl.pallas_call(
        irt_kernel,
        out_shape=jax.ShapeDtypeStruct((1, B_pad), jnp.float32),
        grid_spec=pltpu.PrefetchScalarGridSpec(
            num_scalar_prefetch=0,
            grid=(num_tiles,),
            in_specs=[
                pl.BlockSpec((1, b_tile), lambda i: (0, i)),   # student ids tile
                pl.BlockSpec((1, b_tile), lambda i: (0, i)),   # question ids tile
                pl.BlockSpec((S, D), lambda i: (0, 0)),        # resident theta
                pl.BlockSpec((Q, D), lambda i: (0, 0)),        # resident beta
            ],
            out_specs=pl.BlockSpec((1, b_tile), lambda i: (0, i)),
        ),
        compiler_params=pltpu.CompilerParams(
            dimension_semantics=("parallel",)),                # v7x: 2 TCs
    )(sid, qid, theta_table, beta_table)

    return out[0, :B].reshape(B, 1)


def xavier_normal(key, shape):
    # nn.init.xavier_normal_ for a 2-D weight: std = sqrt(2 / (fan_in + fan_out))
    fan_out, fan_in = shape
    std = (2.0 / (fan_in + fan_out)) ** 0.5
    return std * jax.random.normal(key, shape, dtype=jnp.float32)


if __name__ == "__main__":
    num_students, num_questions, num_dim = 32, 64, 16
    batch = 8

    key = jax.random.PRNGKey(0)
    k_theta, k_beta, k_sid, k_qid = jax.random.split(key, 4)

    theta_table = xavier_normal(k_theta, (num_students, num_dim))
    beta_table = xavier_normal(k_beta, (num_questions, num_dim))

    student_ids = jax.random.randint(k_sid, (batch,), 0, num_students,
                                     dtype=jnp.int32)
    question_ids = jax.random.randint(k_qid, (batch,), 0, num_questions,
                                      dtype=jnp.int32)

    pred = irt_1pl_forward(theta_table, beta_table, student_ids, question_ids)
    pred = jax.block_until_ready(pred)

    # Pure-JAX reference (matches the PyTorch forward).
    ref = jax.nn.sigmoid(
        jnp.sum(theta_table[student_ids] - beta_table[question_ids],
                axis=1, keepdims=True))
    assert pred.shape == (batch, 1)
    assert jnp.allclose(pred, ref, atol=1e-5, rtol=1e-5)

    print("KERNEL_OK")
</pallas_src>

<mosaic_0001>
module attributes {stable_mosaic.version = 11 : i64} {
  func.func @irt_kernel(%arg0: i32, %arg1: memref<1x128xi32, #tpu.memory_space<vmem>>, %arg2: memref<1x128xi32, #tpu.memory_space<vmem>>, %arg3: memref<32x16xf32, #tpu.memory_space<vmem>>, %arg4: memref<64x16xf32, #tpu.memory_space<vmem>>, %arg5: memref<1x128xf32, #tpu.memory_space<vmem>>) attributes {dimension_semantics = [#tpu.dimension_semantics<parallel>], iteration_bounds = array<i64: 1>, scalar_prefetch = 0 : i64, scratch_operands = 0 : i64, tpu.core_type = #tpu.core_type<tc>, window_params = [{transform_indices = @transform_0, window_bounds = array<i64: 1, 128>}, {transform_indices = @transform_1, window_bounds = array<i64: 1, 128>}, {pipeline_mode = #tpu.pipeline_mode<synchronous>, transform_indices = @transform_2, window_bounds = array<i64: 32, 16>}, {pipeline_mode = #tpu.pipeline_mode<synchronous>, transform_indices = @transform_3, window_bounds = array<i64: 64, 16>}, {transform_indices = @transform_4, window_bounds = array<i64: 1, 128>}]} {
    %c0 = arith.constant 0 : index
    %c0_0 = arith.constant 0 : index
    %0 = vector.load %arg3[%c0, %c0_0] : memref<32x16xf32, #tpu.memory_space<vmem>>, vector<32x16xf32>
    %cst = arith.constant dense<0.000000e+00> : vector<32xf32>
    %1 = vector.multi_reduction <add>, %0, %cst [1] : vector<32x16xf32> to vector<32xf32>
    %2 = vector.shape_cast %1 : vector<32xf32> to vector<32x1xf32>
    %c0_1 = arith.constant 0 : index
    %c0_2 = arith.constant 0 : index
    %3 = vector.load %arg4[%c0_1, %c0_2] : memref<64x16xf32, #tpu.memory_space<vmem>>, vector<64x16xf32>
    %cst_3 = arith.constant dense<0.000000e+00> : vector<64xf32>
    %4 = vector.multi_reduction <add>, %3, %cst_3 [1] : vector<64x16xf32> to vector<64xf32>
    %5 = vector.shape_cast %4 : vector<64xf32> to vector<64x1xf32>
    %c0_4 = arith.constant 0 : index
    %c0_5 = arith.constant 0 : index
    %6 = vector.load %arg1[%c0_4, %c0_5] : memref<1x128xi32, #tpu.memory_space<vmem>>, vector<1x128xi32>
    %c0_6 = arith.constant 0 : index
    %c0_7 = arith.constant 0 : index
    %7 = vector.load %arg2[%c0_6, %c0_7] : memref<1x128xi32, #tpu.memory_space<vmem>>, vector<1x128xi32>
    %8 = tpu.iota {dimensions = array<i32: 0>} : vector<32x128xi32>
    %9 = tpu.iota {dimensions = array<i32: 0>} : vector<64x128xi32>
    %10 = vector.broadcast %6 : vector<1x128xi32> to vector<32x128xi32>
    %11 = arith.cmpi eq, %8, %10 : vector<32x128xi32>
    %cst_8 = arith.constant 0.000000e+00 : f32
    %12 = vector.shape_cast %2 : vector<32x1xf32> to vector<32x1xf32>
    %13 = vector.broadcast %12 : vector<32x1xf32> to vector<32x128xf32>
    %14 = vector.broadcast %cst_8 : f32 to vector<32x128xf32>
    %15 = arith.select %11, %13, %14 : vector<32x128xi1>, vector<32x128xf32>
    %cst_9 = arith.constant dense<0.000000e+00> : vector<128xf32>
    %16 = vector.multi_reduction <add>, %15, %cst_9 [0] : vector<32x128xf32> to vector<128xf32>
    %17 = vector.shape_cast %16 : vector<128xf32> to vector<1x128xf32>
    %18 = vector.broadcast %7 : vector<1x128xi32> to vector<64x128xi32>
    %19 = arith.cmpi eq, %9, %18 : vector<64x128xi32>
    %cst_10 = arith.constant 0.000000e+00 : f32
    %20 = vector.shape_cast %5 : vector<64x1xf32> to vector<64x1xf32>
    %21 = vector.broadcast %20 : vector<64x1xf32> to vector<64x128xf32>
    %22 = vector.broadcast %cst_10 : f32 to vector<64x128xf32>
    %23 = arith.select %19, %21, %22 : vector<64x128xi1>, vector<64x128xf32>
    %cst_11 = arith.constant dense<0.000000e+00> : vector<128xf32>
    %24 = vector.multi_reduction <add>, %23, %cst_11 [0] : vector<64x128xf32> to vector<128xf32>
    %25 = vector.shape_cast %24 : vector<128xf32> to vector<1x128xf32>
    %26 = arith.subf %17, %25 : vector<1x128xf32>
    %27 = arith.negf %26 : vector<1x128xf32>
    %28 = math.exp %27 : vector<1x128xf32>
    %cst_12 = arith.constant 1.000000e+00 : f32
    %29 = vector.broadcast %cst_12 : f32 to vector<1x128xf32>
    %30 = arith.addf %29, %28 : vector<1x128xf32>
    %31 = arith.divf %29, %30 : vector<1x128xf32>
    %c0_13 = arith.constant 0 : index
    %c0_14 = arith.constant 0 : index
    %32 = vector.load %arg5[%c0_13, %c0_14] : memref<1x128xf32, #tpu.memory_space<vmem>>, vector<1x128xf32>
    tpu.vector_store %arg5[%c0_13, %c0_14], %31 {strides = array<i32>} : memref<1x128xf32, #tpu.memory_space<vmem>>, vector<1x128xf32>,
    return
  }
  func.func @transform_0(%arg0: i32) -> (i32, i32) {
    %c0_i32 = arith.constant 0 : i32
    %c0_i32_0 = arith.constant 0 : i32
    return %c0_i32, %arg0 : i32, i32
  }
  func.func @transform_1(%arg0: i32) -> (i32, i32) {
    %c0_i32 = arith.constant 0 : i32
    %c0_i32_0 = arith.constant 0 : i32
    return %c0_i32, %arg0 : i32, i32
  }
  func.func @transform_2(%arg0: i32) -> (i32, i32) {
    %c0_i32 = arith.constant 0 : i32
    %c0_i32_0 = arith.constant 0 : i32
    %c0_i32_1 = arith.constant 0 : i32
    return %c0_i32, %c0_i32_0 : i32, i32
  }
  func.func @transform_3(%arg0: i32) -> (i32, i32) {
    %c0_i32 = arith.constant 0 : i32
    %c0_i32_0 = arith.constant 0 : i32
    %c0_i32_1 = arith.constant 0 : i32
    return %c0_i32, %c0_i32_0 : i32, i32
  }
  func.func @transform_4(%arg0: i32) -> (i32, i32) {
    %c0_i32 = arith.constant 0 : i32
    %c0_i32_0 = arith.constant 0 : i32
    return %c0_i32, %arg0 : i32, i32
  }
}

</mosaic_0001>

<bundles_post_ra>
// kernel: tpu_custom_call.1
= control target key start
LH: loop header
LB: loop body
LE: loop exit
PB: predicated region body
PF: predicated region fallthrough
CT: control target
= control target key end

     0   :  { %vm22_vm0 = vcmask 130048   ;;  %s280_s0 = inlined_call_operand.vmem [shape: s32[1,128], index: 0, kind: input, shape index: {}]   ;;  %s281_s1 = inlined_call_operand.vmem [shape: s32[1,128], index: 1, kind: input, shape index: {}]   ;;  %s282_s2 = inlined_call_operand.vmem [shape: f32[32,16], index: 2, kind: input, shape index: {}]   ;;  %s283_s3 = inlined_call_operand.vmem [shape: f32[64,16], index: 3, kind: input, shape index: {}]   ;;  %s284_s4 = inlined_call_operand.hbm [shape: f32[1,128], index: 4, kind: output, shape index: {}]  }
   0x1   :  { %v37_v0 = vld [vmem:[%s283_s3 + $0x10] sm:$0xff]  ;;  %v35_v1 = vld [vmem:[%s283_s3] sm:$0xff]  ;;  %v38_v6 = vld [vmem:[%s283_s3 + $0x18] sm:$0xff] }
   0x2   :  { %v39_v2 = vld [vmem:[%s283_s3 + $0x20] sm:$0xff]  ;;  %v49_v3 = vsel %vm22_vm0, %v37_v0, 0.0  ;;  %v43_v4 = vsel %vm22_vm0, %v35_v1, 0.0  ;;  %v36_v7 = vld [vmem:[%s283_s3 + $0x8] sm:$0xff] }
   0x3   :  { %v55_v5 = vsel %vm22_vm0, %v39_v2, 0.0  ;;  %50 = vadd.xlane.f32.xlu1 %v49_v3  ;;  %44 = vadd.xlane.f32.xlu0 %v43_v4  ;;  %v18_v8 = vld [vmem:[%s282_s2] sm:$0xff] }
   0x4   :  { %56 = vadd.xlane.f32.xlu2 %v55_v5 }
   0x5   :  { %9 = vsyncpa [#allocation3], 0  ;;  %v52_v9 = vsel %vm22_vm0, %v38_v6, 0.0  ;;  %v46_v10 = vsel %vm22_vm0, %v36_v7, 0.0  ;;  %v23_v11 = vsel %vm22_vm0, %v18_v8, 0.0  ;;  %v40_v12 = vld [vmem:[%s283_s3 + $0x28] sm:$0xff]  ;;  %v69_v24 = vlaneseq }
   0x6   :  { %v19_v13 = vld [vmem:[%s282_s2 + $0x8] sm:$0xff]  ;;  %v20_v14 = vld [vmem:[%s282_s2 + $0x10] sm:$0xff]  ;;  %v58_v15 = vsel %vm22_vm0, %v40_v12, 0.0  ;;  %v21_v18 = vld [vmem:[%s282_s2 + $0x18] sm:$0xff]  ;;  %s154_s17 = sshll.u32 %s284_s4, 4  ;;  %s155_s17 = int_to_ptr.hbm [resolvable:$true] %s154_s17 }
   0x7   :  { %v26_v16 = vsel %vm22_vm0, %v19_v13, 0.0  ;;  %v29_v17 = vsel %vm22_vm0, %v20_v14, 0.0  ;;  %v41_v19 = vld [vmem:[%s283_s3 + $0x30] sm:$0xff]  ;;  %v42_v20 = vld [vmem:[%s283_s3 + $0x38] sm:$0xff]  ;;  %v32_v21 = vsel %vm22_vm0, %v21_v18, 0.0  ;;  %v70_v25 = vshrl.u32 %v69_v24, 7 }
   0x8   :  { %v61_v22 = vsel %vm22_vm0, %v41_v19, 0.0  ;;  %v64_v23 = vsel %vm22_vm0, %v42_v20, 0.0  ;;  %v165_v29 = vld [vmem:[%s281_s1] ss:$0 sm:$0xff] }
   0x9   :  { %v71_v30 = vadd.s32 8, %v70_v25  ;;  %v72_v31 = vadd.s32 16, %v70_v25  ;;  %vm97_vm1 = vcmp.eq.s32.totalorder %v70_v25, %v165_v29  ;;  %v73_v32 = vadd.s32 24, %v70_v25  ;;  %v166_v42 = vld [vmem:[%s280_s0] ss:$0 sm:$0xff]  ;;  %s197_s0 = smov [#allocation2]  }
   0xa   :  { %v74_v40 = vadd.s32 32, %v70_v25  ;;  %v75_v43 = vadd.s32 40, %v70_v25  ;;  %vm79_vm7 = vcmp.eq.s32.totalorder %v70_v25, %v166_v42  ;;  %v76_v50 = vadd.s32 48, %v70_v25  ;;  %s152_s1 = sshll.u32 %s197_s0, 4  ;;  %s153_s1 = int_to_ptr.vmem [resolvable:$true] %s152_s1 }
   0xb   :  { %53 = vadd.xlane.f32.xlu1 %v52_v9  ;;  %47 = vadd.xlane.f32.xlu0 %v46_v10  ;;  %vm98_vm2 = vcmp.eq.s32.totalorder %v71_v30, %v165_v29  ;;  %vm99_vm3 = vcmp.eq.s32.totalorder %v72_v31, %v165_v29  ;;  %vm100_vm4 = vcmp.eq.s32.totalorder %v73_v32, %v165_v29  ;;  %v77_v53 = vadd.s32 56, %v70_v25 }
   0xc   :  { %24 = vadd.xlane.f32.xlu2 %v23_v11  ;;  %vm80_vm5 = vcmp.eq.s32.totalorder %v71_v30, %v166_v42  ;;  %vm101_vm6 = vcmp.eq.s32.totalorder %v74_v40, %v165_v29  ;;  %vm102_vm8 = vcmp.eq.s32.totalorder %v75_v43, %v165_v29  ;;  %vm81_vm9 = vcmp.eq.s32.totalorder %v72_v31, %v166_v42 }
   0xd   :  { %vm82_vm10 = vcmp.eq.s32.totalorder %v73_v32, %v166_v42  ;;  %vm103_vm11 = vcmp.eq.s32.totalorder %v76_v50, %v165_v29  ;;  %vm104_vm12 = vcmp.eq.s32.totalorder %v77_v53, %v165_v29 }
  0x13   :  { %59 = vadd.xlane.f32.xlu1 %v58_v15  ;;  %27 = vadd.xlane.f32.xlu0 %v26_v16 }
  0x14   :  { %30 = vadd.xlane.f32.xlu2 %v29_v17 }
  0x1b   :  { %33 = vadd.xlane.f32.xlu1 %v32_v21  ;;  %62 = vadd.xlane.f32.xlu0 %v61_v22 }
  0x1c   :  { %65 = vadd.xlane.f32.xlu2 %v64_v23 }
  0x76   :  { %v51_v26 = vpop.xlane.xlu1 %50  ;;  %v45_v27 = vpop.xlane.xlu0 %44 }
  0x77   :  { %v57_v28 = vpop.xlane.xlu2 %56  ;;  %v105_v35 = vsel %vm97_vm1, %v45_v27, 0.0  ;;  %v107_v39 = vsel %vm99_vm3, %v51_v26, 0.0 }
  0x78   :  { %v109_v51 = vsel %vm101_vm6, %v57_v28, 0.0 }
  0x7e   :  { %v54_v33 = vpop.xlane.xlu1 %53  ;;  %v48_v34 = vpop.xlane.xlu0 %47 }
  0x7f   :  { %v106_v36 = vsel %vm98_vm2, %v48_v34, 0.0  ;;  %v25_v37 = vpop.xlane.xlu2 %24  ;;  %v108_v44 = vsel %vm100_vm4, %v54_v33, 0.0 }
  0x80   :  { %v113_v38 = vadd.f32 %v106_v36, %v105_v35  ;;  %v83_v52 = vsel %vm79_vm7, %v25_v37, 0.0 }
  0x82   :  { %v114_v41 = vadd.f32 %v113_v38, %v107_v39 }
  0x84   :  { %v115_v46 = vadd.f32 %v114_v41, %v108_v44 }
  0x86   :  { %v60_v45 = vpop.xlane.xlu1 %59  ;;  %v28_v47 = vpop.xlane.xlu0 %27  ;;  %v116_v54 = vadd.f32 %v115_v46, %v109_v51 }
  0x87   :  { %v84_v48 = vsel %vm80_vm5, %v28_v47, 0.0  ;;  %v31_v49 = vpop.xlane.xlu2 %30  ;;  %v110_v56 = vsel %vm102_vm8, %v60_v45, 0.0 }
  0x88   :  { %v87_v55 = vadd.f32 %v84_v48, %v83_v52  ;;  %v85_v57 = vsel %vm81_vm9, %v31_v49, 0.0  ;;  %v117_v58 = vadd.f32 %v116_v54, %v110_v56 }
  0x8a   :  { %v88_v59 = vadd.f32 %v87_v55, %v85_v57 }
  0x8e   :  { %v34_v60 = vpop.xlane.xlu1 %33  ;;  %v63_v61 = vpop.xlane.xlu0 %62 }
  0x8f   :  { %v86_v62 = vsel %vm82_vm10, %v34_v60, 0.0  ;;  %v111_v63 = vsel %vm103_vm11, %v63_v61, 0.0  ;;  %v66_v0 = vpop.xlane.xlu2 %65 }
  0x90   :  { %v89_v1 = vadd.f32 %v88_v59, %v86_v62  ;;  %v118_v2 = vadd.f32 %v117_v58, %v111_v63  ;;  %v112_v3 = vsel %vm104_vm12, %v66_v0, 0.0 }
  0x92   :  { %v90_v4 = vrot.slane %v89_v1, 4  ;;  %v119_v5 = vadd.f32 %v118_v2, %v112_v3 }
  0x94   :  { %v91_v6 = vadd.f32 %v90_v4, %v89_v1  ;;  %v120_v7 = vrot.slane %v119_v5, 4 }
  0x96   :  { %v92_v8 = vrot.slane %v91_v6, 2  ;;  %v121_v9 = vadd.f32 %v120_v7, %v119_v5 }
  0x98   :  { %v93_v10 = vadd.f32 %v92_v8, %v91_v6  ;;  %v122_v11 = vrot.slane %v121_v9, 2 }
  0x9a   :  { %v94_v12 = vrot.slane %v93_v10, 1  ;;  %v123_v13 = vadd.f32 %v122_v11, %v121_v9 }
  0x9c   :  { %v124_v14 = vrot.slane %v123_v13, 1  ;;  %v95_v15 = vadd.f32 %v94_v12, %v93_v10 }
  0x9e   :  { %v125_v16 = vadd.f32 %v124_v14, %v123_v13 }
  0xa0   :  { %v126_v17 = vsub.f32 %v95_v15, %v125_v16 }
  0xa2   :  { %v163_v18 = vmul.f32 -1.442695, %v126_v17 }
  0xa4   :  { %167 = vpow2.f32 %v163_v18 }
  0xaa   :  { %v168_v19 = vpop.eup %167 }
  0xab   :  { %v130_v20 = vadd.f32 1.0, %v168_v19 }
  0xad   :  { %169 = vrcp.f32 %v130_v20  ;;  %v142_v24 = vand.u32 2147483648, %v130_v20  ;;  %v140_v26 = vand.u32 2147483647, %v130_v20  ;;  %vm136_vm14 = vweird.f32 %v130_v20 }
  0xaf   :  { %v143_v28 = vor.u32 1.1754944e-38, %v142_v24  ;;  %vm141_vm0 = vcmp.eq.f32.partialorder %v140_v26, 8.507059e+37 }
  0xb3   :  { %v170_v21 = vpop.eup %169 }
  0xb4   :  { %v132_v22 = vmul.f32 %v170_v21, %v130_v20  ;;  %vm137_vm13 = vweird.f32 %v170_v21 }
  0xb5   :  { %vm138_vm15 = vmor %vm136_vm14, %vm137_vm13 }
  0xb6   :  { %v133_v23 = vsub.f32 1.0, %v132_v22 }
  0xb8   :  { %v134_v25 = vmul.f32 %v170_v21, %v133_v23 }
  0xba   :  { %v135_v27 = vadd.f32 %v170_v21, %v134_v25 }
  0xbc   :  { %v139_v29 = vsel %vm138_vm15, %v170_v21, %v135_v27 }
  0xbd   :  { %v144_v30 = vsel %vm141_vm0, %v143_v28, %v139_v29 }
  0xbe   :  { %146 = vst [vmem:[#allocation2] sm:$0x1] %v144_v30 }
  0xbf   :  { %157 = dma.vmem_to_hbm [thread:$0]  %s153_s1, 16, %s155_s17, [#allocation3]  }
  0xc0   :  { %195 = dma.done.wait [#allocation3], 16  }
  0xc1   :  { %196 = vsyncadd [#allocation3], 4294967280 }
  0xc2   :  { %162 = vsyncpa [#allocation3], 1 }

</bundles_post_ra>
